<compile_context>
chip_gen: v7x
topology: tpu7x:2x2x1
jax: 0.10.0
libtpu: 0.0.40
codegen_flags: <defaults>
</compile_context>

<pallas_src>
import math

import jax
import jax.numpy as jnp
from jax.experimental import pallas as pl
from jax.experimental.pallas import tpu as pltpu

_LANES = 128
_SUBLANES = 8


def _round_up(x, m):
    return ((x + m - 1) // m) * m


def _spiral_kernel(a_ref, z_ref, o_ref):
    # a_ref: (4,) f32 in SMEM -> [a00, a01, a10, a11] (row-major flatten of A)
    # z_ref: (S_blk, 128) f32 in VMEM.  Flat row-major (B, 2) data:
    #   even lanes hold z[b, 0], odd lanes hold z[b, 1] of the same batch elem
    #   (pairs never straddle a row because 128 is even).
    # o_ref: (S_blk, 128) f32 in VMEM, same layout as z_ref.
    a00 = a_ref[0]
    a01 = a_ref[1]
    a10 = a_ref[2]
    a11 = a_ref[3]

    x = z_ref[...]                                           # (S_blk, 128)

    lane = jax.lax.broadcasted_iota(jnp.int32, x.shape, 1)
    even = (lane % 2) == 0

    # Pair-swap adjacent lanes (within disjoint (2k, 2k+1) pairs):
    #   even lane l takes x[l+1]   ; odd lane l takes x[l-1].
    x_next = pltpu.roll(x, shift=_LANES - 1, axis=1)         # x_next[l] = x[l+1]
    x_prev = pltpu.roll(x, shift=1, axis=1)                  # x_prev[l] = x[l-1]
    x_swap = jnp.where(even, x_next, x_prev)

    # out_even = a00*z0 + a01*z1 ; out_odd = a10*z0 + a11*z1
    c_self = jnp.where(even, a00, a11)
    c_other = jnp.where(even, a01, a10)
    o_ref[...] = (c_self * x + c_other * x_swap).astype(o_ref.dtype)


def spiral_dynamics(A, z_t, *, target_block_bytes=2 << 20):
    """Batched matrix-vector product out[b] = A @ z_t[b] via a Pallas kernel.

    A:   (2, 2) float32
    z_t: (B, 2) float32
    """
    B, D = z_t.shape
    assert A.shape == (D, D) and D == 2

    total = B * D
    flat = jnp.reshape(z_t, (total,))            # free bitcast (row-major)

    # Rows of 128 lanes; pick a sublane-block that is a multiple of 8 and
    # targets ~target_block_bytes of payload per grid step.
    rows = pl.cdiv(total, _LANES)
    bytes_per_row = _LANES * 4
    tgt_rows = max(_SUBLANES,
                   (target_block_bytes // bytes_per_row) // _SUBLANES * _SUBLANES)
    rows_min = _round_up(rows, _SUBLANES)
    if rows_min <= tgt_rows:
        # Small input: still try to give v7x's two TensorCores one block each.
        if rows_min >= 2 * _SUBLANES:
            s_blk = _round_up(pl.cdiv(rows_min, 2), _SUBLANES)
        else:
            s_blk = _SUBLANES
    else:
        s_blk = tgt_rows

    rows_padded = _round_up(rows, s_blk)
    padded_total = rows_padded * _LANES
    if padded_total != total:
        flat = jnp.pad(flat, (0, padded_total - total))
    z2d = jnp.reshape(flat, (rows_padded, _LANES))   # free reshape (row-major)

    a_flat = jnp.reshape(A.astype(z_t.dtype), (4,))  # [a00, a01, a10, a11]

    out2d = pl.pallas_call(
        _spiral_kernel,
        out_shape=jax.ShapeDtypeStruct((rows_padded, _LANES), z_t.dtype),
        grid_spec=pltpu.PrefetchScalarGridSpec(
            num_scalar_prefetch=1,                   # a_flat lands in SMEM
            grid=(rows_padded // s_blk,),
            in_specs=[
                pl.BlockSpec((s_blk, _LANES), lambda i, a: (i, 0)),
            ],
            out_specs=pl.BlockSpec((s_blk, _LANES), lambda i, a: (i, 0)),
        ),
        compiler_params=pltpu.CompilerParams(
            dimension_semantics=("parallel",),
            vmem_limit_bytes=48 << 20,
        ),
    )(a_flat, z2d)

    out_flat = jnp.reshape(out2d, (padded_total,))
    return jnp.reshape(out_flat[:total], (B, D))


def make_spiral_A(w=math.pi / 16, rho=0.98, dtype=jnp.float32):
    c = jnp.cos(jnp.asarray(w, dtype))
    s = jnp.sin(jnp.asarray(w, dtype))
    return rho * jnp.array([[c, s], [-s, c]], dtype=dtype)


if __name__ == "__main__":
    # Deterministic parameters (from the module's __init__) and example input.
    A = make_spiral_A()

    key = jax.random.PRNGKey(0)
    B = 8  # small batch of 2-D spiral states
    z_t = jax.random.normal(key, (B, 2), dtype=jnp.float32)

    out = spiral_dynamics(A, z_t)
    out = jax.block_until_ready(out)

    # Reference check (plain JAX): out[b, i] = sum_j A[i, j] * z_t[b, j]
    ref = jnp.einsum("ij,bj->bi", A, z_t)
    assert out.shape == (B, 2)
    assert jnp.allclose(out, ref, atol=1e-5, rtol=1e-5)

    print("KERNEL_OK")
</pallas_src>

<mosaic_0001>
module attributes {stable_mosaic.version = 11 : i64} {
  func.func @_spiral_kernel(%arg0: i32, %arg1: memref<4xf32, #tpu.memory_space<smem>>, %arg2: memref<8x128xf32, #tpu.memory_space<vmem>>, %arg3: memref<8x128xf32, #tpu.memory_space<vmem>>) attributes {dimension_semantics = [#tpu.dimension_semantics<parallel>], iteration_bounds = array<i64: 1>, scalar_prefetch = 1 : i64, scratch_operands = 0 : i64, tpu.core_type = #tpu.core_type<tc>, window_params = [{transform_indices = @transform_0, window_bounds = array<i64: 8, 128>}, {transform_indices = @transform_1, window_bounds = array<i64: 8, 128>}]} {
    %c0 = arith.constant 0 : index
    %0 = memref.load %arg1[%c0] : memref<4xf32, #tpu.memory_space<smem>>
    %c1 = arith.constant 1 : index
    %1 = memref.load %arg1[%c1] : memref<4xf32, #tpu.memory_space<smem>>
    %c2 = arith.constant 2 : index
    %2 = memref.load %arg1[%c2] : memref<4xf32, #tpu.memory_space<smem>>
    %c3 = arith.constant 3 : index
    %3 = memref.load %arg1[%c3] : memref<4xf32, #tpu.memory_space<smem>>
    %c0_0 = arith.constant 0 : index
    %c0_1 = arith.constant 0 : index
    %4 = vector.load %arg2[%c0_0, %c0_1] : memref<8x128xf32, #tpu.memory_space<vmem>>, vector<8x128xf32>
    %5 = tpu.iota {dimensions = array<i32: 1>} : vector<8x128xi32>
    %c2_i32 = arith.constant 2 : i32
    %c0_i32 = arith.constant 0 : i32
    %6 = arith.cmpi eq, %c2_i32, %c0_i32 : i32
    %c1_i32 = arith.constant 1 : i32
    %7 = arith.select %6, %c1_i32, %c2_i32 : i32
    %8 = vector.broadcast %7 : i32 to vector<8x128xi32>
    %9 = arith.remsi %5, %8 : vector<8x128xi32>
    %c0_i32_2 = arith.constant 0 : i32
    %10 = vector.broadcast %c0_i32_2 : i32 to vector<8x128xi32>
    %11 = arith.cmpi ne, %9, %10 : vector<8x128xi32>
    %c0_i32_3 = arith.constant 0 : i32
    %12 = vector.broadcast %c0_i32_3 : i32 to vector<8x128xi32>
    %13 = arith.cmpi slt, %9, %12 : vector<8x128xi32>
    %c0_i32_4 = arith.constant 0 : i32
    %14 = arith.cmpi slt, %7, %c0_i32_4 : i32
    %15 = vector.broadcast %14 : i1 to vector<8x128xi1>
    %16 = vector.broadcast %15 : vector<8x128xi1> to vector<8x128xi1>
    %17 = arith.xori %13, %16 : vector<8x128xi1>
    %18 = arith.andi %17, %11 : vector<8x128xi1>
    %19 = vector.broadcast %7 : i32 to vector<8x128xi32>
    %20 = arith.addi %9, %19 : vector<8x128xi32>
    %21 = arith.select %18, %20, %9 : vector<8x128xi1>, vector<8x128xi32>
    %c0_i32_5 = arith.constant 0 : i32
    %22 = vector.broadcast %c0_i32_5 : i32 to vector<8x128xi32>
    %23 = arith.cmpi eq, %21, %22 : vector<8x128xi32>
    %c127_i32 = arith.constant 127 : i32
    %24 = tpu.dynamic_rotate %4 by %c127_i32 dim 1 : vector<8x128xf32>, i32 -> vector<8x128xf32>
    %c1_i32_6 = arith.constant 1 : i32
    %25 = tpu.dynamic_rotate %4 by %c1_i32_6 dim 1 : vector<8x128xf32>, i32 -> vector<8x128xf32>
    %26 = arith.select %23, %24, %25 : vector<8x128xi1>, vector<8x128xf32>
    %27 = vector.broadcast %0 : f32 to vector<8x128xf32>
    %28 = vector.broadcast %3 : f32 to vector<8x128xf32>
    %29 = arith.select %23, %27, %28 : vector<8x128xi1>, vector<8x128xf32>
    %30 = vector.broadcast %1 : f32 to vector<8x128xf32>
    %31 = vector.broadcast %2 : f32 to vector<8x128xf32>
    %32 = arith.select %23, %30, %31 : vector<8x128xi1>, vector<8x128xf32>
    %33 = arith.mulf %29, %4 : vector<8x128xf32>
    %34 = arith.mulf %32, %26 : vector<8x128xf32>
    %35 = arith.addf %33, %34 : vector<8x128xf32>
    %c0_7 = arith.constant 0 : index
    %c0_8 = arith.constant 0 : index
    %36 = vector.load %arg3[%c0_7, %c0_8] : memref<8x128xf32, #tpu.memory_space<vmem>>, vector<8x128xf32>
    tpu.vector_store %arg3[%c0_7, %c0_8], %35 {strides = array<i32>} : memref<8x128xf32, #tpu.memory_space<vmem>>, vector<8x128xf32>,
    return
  }
  func.func @transform_0(%arg0: i32, %arg1: memref<4xf32, #tpu.memory_space<smem>>) -> (i32, i32) {
    %c0_i32 = arith.constant 0 : i32
    %c0_i32_0 = arith.constant 0 : i32
    return %arg0, %c0_i32 : i32, i32
  }
  func.func @transform_1(%arg0: i32, %arg1: memref<4xf32, #tpu.memory_space<smem>>) -> (i32, i32) {
    %c0_i32 = arith.constant 0 : i32
    %c0_i32_0 = arith.constant 0 : i32
    return %arg0, %c0_i32 : i32, i32
  }
}

</mosaic_0001>

<bundles_post_ra>
// kernel: tpu_custom_call.1
= control target key start
LH: loop header
LB: loop body
LE: loop exit
PB: predicated region body
PF: predicated region fallthrough
CT: control target
= control target key end

     0   :  { %s200_s0 = inlined_call_operand.hbm [shape: f32[4], index: 0, kind: input, shape index: {}]   ;;  %s201_s1 = inlined_call_operand.hbm [shape: f32[8,128], index: 1, kind: input, shape index: {}]   ;;  %s202_s2 = inlined_call_operand.hbm [shape: f32[8,128], index: 2, kind: output, shape index: {}]  }
   0x1   :  { %s84_s11 = scalar_lea.hbm %s200_s0, 16 }
   0x2   :  { %p85_p0 = scmp.ne.s32.totalorder %s200_s0, %s84_s11  ;;  %p88_p1 = scmp.lt.u32.totalorder %s84_s11, %s200_s0 }
   0x4   :  { %p90_p2 = pnand %p88_p1, %p85_p0 }
   0x6   :  { %93 = shalt.err (!%p90_p2)  }
   0x7   :  { %s144_s16 = smov [#allocation3]  }
   0x8   :  { %8 = dma.hbm_to_smem %s200_s0, 16, %s144_s16, [#allocation2] }
   0x9   :  { %138 = dma.done.wait [#allocation2], 16 }
   0xa   :  { %139 = vsyncadd [#allocation2], 4294967280 }
   0xb   :  { %10 = sfence }
   0xc   :  { %11 = vsyncpa [#allocation5], 0 }
   0xd   :  { %12 = vsyncpa [#allocation6], 0  ;;  %s145_s19 = smov [#allocation4]   ;;  %s94_s23 = scalar_lea.hbm %s201_s1, 128 }
   0xe   :  { %s19_s20 = sshll.u32 %s145_s19, 4  ;;  %p95_p3 = scmp.ne.s32.totalorder %s201_s1, %s94_s23  ;;  %s20_s20 = int_to_ptr.vmem [resolvable:$true] %s19_s20 }
   0xf   :  { %p98_p4 = scmp.lt.u32.totalorder %s94_s23, %s201_s1 }
  0x11   :  { %p100_p5 = pnand %p98_p4, %p95_p3 }
  0x13   :  { %103 = shalt.err (!%p100_p5)
}
  0x14   :  { %s104_s0 = scalar_lea.vmem %s20_s20, 128  ;;  %p109_p7 = scmp.lt.s32.totalorder %s20_s20, %s20_s20 }
  0x15   :  { %p105_p6 = scmp.ne.s32.totalorder %s20_s20, %s104_s0  ;;  %p110_p8 = scmp.lt.s32.totalorder %s104_s0, %s104_s0 }
  0x17   :  { %p111_p9 = por %p110_p8, %p109_p7 }
  0x19   :  { %p112_p10 = pnand %p111_p9, %p105_p6 }
  0x1b   :  { %115 = shalt.err (!%p112_p10)
}
  0x1c   :  { %22 = dma.hbm_to_vmem [thread:$0]  %s201_s1, 128, %s20_s20, [#allocation5]  }
  0x1d   :  { %140 = dma.done.wait [#allocation5], 128  }
  0x1e   :  { %141 = vsyncadd [#allocation5], 4294967168  ;;  %v30_v0 = vld [vmem:[#allocation4] sm:$0xff]  ;;  %s146_s30 = smov 127   ;;  %s147_s3 = smov 1   ;;  %v31_v1 = vlaneseq }
  0x1f   :  { %46 = vrot.lane.b32.xlu0 %v30_v0, %s146_s30  ;;  %s26_s4 = sld [smem:[#allocation3]]  ;;  %s78_s5 = sld [smem:[#allocation3 + $0x3]] }
  0x20   :  { %v32_v2 = vand.u32 127, %v31_v1  ;;  %s76_s6 = sld [smem:[#allocation3 + $0x1]]  ;;  %s77_s7 = sld [smem:[#allocation3 + $0x2]] }
  0x21   :  { %s148_s1 = smov [#allocation7]  }
  0x22   :  { %v37_v3 = vand.u32 1, %v32_v2  ;;  %s67_s8 = sshll.u32 %s148_s1, 4  ;;  %s68_s8 = int_to_ptr.vmem [resolvable:$true] %s67_s8 }
  0x23   :  { %48 = vrot.lane.b32.xlu0 %v30_v0, %s147_s3  ;;  %s116_s9 = scalar_lea.vmem %s68_s8, 128  ;;  %p121_p12 = scmp.lt.s32.totalorder %s68_s8, %s68_s8 }
  0x24   :  { %vm45_vm0 = vcmp.eq.s32.totalorder %v37_v3, 0  ;;  %p117_p11 = scmp.ne.s32.totalorder %s68_s8, %s116_s9  ;;  %p122_p13 = scmp.lt.s32.totalorder %s116_s9, %s116_s9 }
  0x25   :  { %v51_v4 = vstv %s26_s4  ;;  %v52_v5 = vstv %s78_s5 }
  0x26   :  { %v54_v7 = vstv %s76_s6  ;;  %v55_v8 = vstv %s77_s7  ;;  %v53_v9 = vsel %vm45_vm0, %v51_v4, %v52_v5  ;;  %p123_p0 = por %p122_p13, %p121_p12 }
  0x27   :  { %v56_v10 = vsel %vm45_vm0, %v54_v7, %v55_v8  ;;  %v57_v11 = vmul.f32 %v53_v9, %v30_v0 }
  0x28   :  { %p124_p1 = pnand %p123_p0, %p117_p11 }
  0x91   :  { %v47_v6 = vpop.permute.xlu0 %46 }
  0x95   :  { %v49_v12 = vpop.permute.xlu0 %48 }
  0x96   :  { %v50_v13 = vsel %vm45_vm0, %v47_v6, %v49_v12 }
  0x97   :  { %v58_v14 = vmul.f32 %v56_v10, %v50_v13 }
  0x99   :  { %v59_v15 = vadd.f32 %v58_v14, %v57_v11 }
  0x9b   :  { %60 = vst [vmem:[#allocation7] sm:$0xff] %v59_v15 }
  0x9c   :  { %127 = shalt.err (!%p124_p1)
}
  0x9d   :  { %s128_s12 = scalar_lea.hbm %s202_s2, 128 }
  0x9e   :  { %p129_p2 = scmp.ne.s32.totalorder %s202_s2, %s128_s12  ;;  %p132_p3 = scmp.lt.u32.totalorder %s128_s12, %s202_s2 }
  0xa0   :  { %p134_p4 = pnand %p132_p3, %p129_p2 }
  0xa2   :  { %137 = shalt.err (!%p134_p4)
}
  0xa3   :  { %70 = dma.vmem_to_hbm [thread:$0]  %s68_s8, 128, %s202_s2, [#allocation6]  }
  0xa4   :  { %142 = dma.done.wait [#allocation6], 128  }
  0xa5   :  { %143 = vsyncadd [#allocation6], 4294967168 }
  0xa6   :  { %74 = vsyncpa [#allocation5], 1 }
  0xa7   :  { %75 = vsyncpa [#allocation6], 1 }

</bundles_post_ra>
